<compile_context>
chip_gen: v6e
topology: v6e:2x2x1
jax: 0.10.0
libtpu: 0.0.40
codegen_flags: <defaults>
</compile_context>

<pallas_src>
import functools

import jax
import jax.numpy as jnp
from jax.experimental import pallas as pl
from jax.experimental.pallas import tpu as pltpu

_BN_EPS = 1e-5


# --------------------------------------------------------------------------------
# tile-size helpers (always return a divisor of n; full dim if nothing nicer fits)
def _row_tile(n, target):
    if n <= target:
        return n
    start = target - (target % 8)
    for t in range(start, 7, -8):
        if n % t == 0:
            return t
    return n


def _lane_tile(n, target):
    if n <= target:
        return n
    start = target - (target % 128)
    for t in range(start, 127, -128):
        if n % t == 0:
            return t
    return n


def _ceil_to(n, m):
    return ((n + m - 1) // m) * m


# --------------------------------------------------------------------------------
# Encoder fused kernel (intermediate layers):
#   x = relu(prev_scale * h + prev_shift)  (skipped for the first layer)
#   y = x @ w + b          (bf16 MXU operands, f32 accumulation; VPU MACs for K<=8)
#   y -> HBM in bf16;  per-channel sum / sum-of-squares accumulated in f32
#   (partial per 'parallel' slice, reduced in JAX glue).
def _enc_fused_kernel(h_ref, w_ref, b_ref, scale_ref, shift_ref,
                      y_ref, s1_ref, s2_ref, *, apply_act, tiny_k):
    j = pl.program_id(1)

    @pl.when(j == 0)
    def _():
        s1_ref[...] = jnp.zeros(s1_ref.shape, s1_ref.dtype)
        s2_ref[...] = jnp.zeros(s2_ref.shape, s2_ref.dtype)

    x = h_ref[...].astype(jnp.float32)
    if apply_act:
        x = jnp.maximum(x * scale_ref[...] + shift_ref[...], 0.0)

    if tiny_k:
        # Tiny-K contraction on the VPU (unrolled broadcast MACs): avoids padding a
        # K=3 contraction up to the MXU's 128/256.
        wf = w_ref[...].astype(jnp.float32)
        cin = w_ref.shape[0]
        y = x[:, 0:1] * wf[0:1, :]
        for d in range(1, cin):
            y = y + x[:, d:d + 1] * wf[d:d + 1, :]
        y = y + b_ref[...]
    else:
        y = jnp.dot(x.astype(jnp.bfloat16), w_ref[...],
                    preferred_element_type=jnp.float32) + b_ref[...]

    y_ref[...] = y.astype(y_ref.dtype)
    s1_ref[...] = s1_ref[...] + jnp.sum(y, axis=0).reshape(1, 1, -1)
    s2_ref[...] = s2_ref[...] + jnp.sum(y * y, axis=0).reshape(1, 1, -1)


def enc_fused(feats, w, b, scale, shift, *, apply_act):
    M, cin = feats.shape
    cout = w.shape[1]
    tiny = cin <= 8
    # Smaller row tile for the K=3 first layer (its (TM, 3) block lane-pads 3->128).
    TM = _row_tile(M, 1024 if tiny else 2048)
    n_tiles = M // TM
    npar = 2 if (n_tiles >= 2 and n_tiles % 2 == 0) else 1   # engage both v7x TCs
    inner = n_tiles // npar

    kern = functools.partial(_enc_fused_kernel, apply_act=apply_act, tiny_k=tiny)
    return pl.pallas_call(
        kern,
        out_shape=(
            jax.ShapeDtypeStruct((M, cout), jnp.bfloat16),        # pre-BN y (bf16)
            jax.ShapeDtypeStruct((npar, 1, cout), jnp.float32),   # partial sum
            jax.ShapeDtypeStruct((npar, 1, cout), jnp.float32),   # partial sum-of-sq
        ),
        grid=(npar, inner),
        in_specs=[
            pl.BlockSpec((TM, cin), lambda i, j: (i * inner + j, 0)),
            pl.BlockSpec((cin, cout), lambda i, j: (0, 0)),
            pl.BlockSpec((1, cout), lambda i, j: (0, 0)),
            pl.BlockSpec((1, cin), lambda i, j: (0, 0)),
            pl.BlockSpec((1, cin), lambda i, j: (0, 0)),
        ],
        out_specs=(
            pl.BlockSpec((TM, cout), lambda i, j: (i * inner + j, 0)),
            pl.BlockSpec((1, 1, cout), lambda i, j: (i, 0, 0)),
            pl.BlockSpec((1, 1, cout), lambda i, j: (i, 0, 0)),
        ),
        compiler_params=pltpu.CompilerParams(
            dimension_semantics=("parallel", "arbitrary")),
    )(feats, w, b, scale, shift)


# --------------------------------------------------------------------------------
# Encoder LAST layer: same fused BN+ReLU+matmul, but y never touches HBM.
# Accumulates (per batch, per channel) running max AND min of pre-BN y plus global
# BN stats.  latent = relu(scale*max_or_min + shift) is computed in JAX glue
# (min path needed when scale = gamma*rsqrt(var+eps) < 0; relu is monotone).
def _enc_last_kernel(h_ref, w_ref, b_ref, scale_ref, shift_ref,
                     s1_ref, s2_ref, ymax_ref, ymin_ref, *, apply_act, tiny_k):
    p = pl.program_id(1)

    @pl.when(p == 0)
    def _():
        s1_ref[...] = jnp.zeros(s1_ref.shape, s1_ref.dtype)
        s2_ref[...] = jnp.zeros(s2_ref.shape, s2_ref.dtype)
        ymax_ref[...] = jnp.full(ymax_ref.shape, -jnp.inf, ymax_ref.dtype)
        ymin_ref[...] = jnp.full(ymin_ref.shape, jnp.inf, ymin_ref.dtype)

    x = h_ref[0].astype(jnp.float32)                       # (TP, Cin)
    if apply_act:
        x = jnp.maximum(x * scale_ref[...] + shift_ref[...], 0.0)

    if tiny_k:
        wf = w_ref[...].astype(jnp.float32)
        cin = w_ref.shape[0]
        y = x[:, 0:1] * wf[0:1, :]
        for d in range(1, cin):
            y = y + x[:, d:d + 1] * wf[d:d + 1, :]
        y = y + b_ref[...]
    else:
        y = jnp.dot(x.astype(jnp.bfloat16), w_ref[...],
                    preferred_element_type=jnp.float32) + b_ref[...]

    s1_ref[...] = s1_ref[...] + jnp.sum(y, axis=0).reshape(1, 1, -1)
    s2_ref[...] = s2_ref[...] + jnp.sum(y * y, axis=0).reshape(1, 1, -1)
    ymax_ref[...] = jnp.maximum(ymax_ref[...], jnp.max(y, axis=0).reshape(1, 1, -1))
    ymin_ref[...] = jnp.minimum(ymin_ref[...], jnp.min(y, axis=0).reshape(1, 1, -1))


def enc_last(h_bpc, w, b, scale, shift, *, apply_act):
    B, P, cin = h_bpc.shape
    cout = w.shape[1]
    tiny = cin <= 8
    TP = _row_tile(P, 2048)
    kern = functools.partial(_enc_last_kernel, apply_act=apply_act, tiny_k=tiny)
    return pl.pallas_call(
        kern,
        out_shape=tuple(jax.ShapeDtypeStruct((B, 1, cout), jnp.float32)
                        for _ in range(4)),
        grid=(B, P // TP),
        in_specs=[
            pl.BlockSpec((1, TP, cin), lambda bb, p: (bb, p, 0)),
            pl.BlockSpec((cin, cout), lambda bb, p: (0, 0)),
            pl.BlockSpec((1, cout), lambda bb, p: (0, 0)),
            pl.BlockSpec((1, cin), lambda bb, p: (0, 0)),
            pl.BlockSpec((1, cin), lambda bb, p: (0, 0)),
        ],
        out_specs=tuple(pl.BlockSpec((1, 1, cout), lambda bb, p: (bb, 0, 0))
                        for _ in range(4)),
        compiler_params=pltpu.CompilerParams(
            dimension_semantics=("parallel", "arbitrary")),
    )(h_bpc, w, b, scale, shift)


# --------------------------------------------------------------------------------
# Decoder: all Linear + ReLU layers fused into one pallas_call; B padded to 8 rows
# so the output store is not a sub-8-sublane masked store.
def _decoder_kernel(*refs):
    x_ref = refs[0]
    o_ref = refs[-1]
    wb = refs[1:-1]
    n = len(wb) // 2
    h = x_ref[...].astype(jnp.float32)
    for i in range(n):
        w = wb[2 * i][...]
        b = wb[2 * i + 1][...]
        h = jnp.dot(h.astype(jnp.bfloat16), w,
                    preferred_element_type=jnp.float32) + b
        h = jnp.maximum(h, 0.0)   # reference Decoder applies activation on last layer too
    o_ref[...] = h


def decoder_fused(latent, dec_params):
    B = latent.shape[0]
    Bp = _ceil_to(B, 8)
    if Bp != B:
        latent = jnp.pad(latent, ((0, Bp - B), (0, 0)))
    dout = dec_params[-1][0].shape[1]
    args = [latent]
    in_specs = [pl.BlockSpec(latent.shape, lambda i: (0, 0))]
    for (w, b) in dec_params:
        args += [w, b]
        in_specs += [pl.BlockSpec(w.shape, lambda i: (0, 0)),
                     pl.BlockSpec(b.shape, lambda i: (0, 0))]
    out = pl.pallas_call(
        _decoder_kernel,
        out_shape=jax.ShapeDtypeStruct((Bp, dout), jnp.float32),
        grid=(1,),
        in_specs=in_specs,
        out_specs=pl.BlockSpec((Bp, dout), lambda i: (0, 0)),
        compiler_params=pltpu.CompilerParams(dimension_semantics=("arbitrary",)),
    )(*args)
    return out[:B]


# --------------------------------------------------------------------------------
# Chamfer distance: streaming per-query min, never materializes (B, P, P) nor even
# the (TK, TQ) tile -- 8-row target chunks keep the running min in vregs.
# Queries are lane-dense (B, 3, Pq); targets are (B, Pk, 3).
def _chamfer_min_kernel(q_ref, k_ref, o_ref, *, chunk):
    ki = pl.program_id(2)

    @pl.when(ki == 0)
    def _():
        o_ref[...] = jnp.full(o_ref.shape, jnp.inf, o_ref.dtype)

    q = q_ref[0].astype(jnp.float32)                  # (3, TQ)   queries on lanes
    tk = k_ref.shape[1]
    tq = q.shape[1]

    run = jnp.full((chunk, tq), jnp.inf, jnp.float32)
    for c in range(tk // chunk):                      # unrolled; temps stay in vregs
        k = k_ref[0, c * chunk:(c + 1) * chunk, :].astype(jnp.float32)   # (chunk, 3)
        d0 = k[:, 0:1] - q[0:1, :]
        d1 = k[:, 1:2] - q[1:2, :]
        d2 = k[:, 2:3] - q[2:3, :]
        d = d0 * d0 + d1 * d1 + d2 * d2               # (chunk, TQ) on the VPU
        run = jnp.minimum(run, d)

    dmin = jnp.min(run, axis=0)                       # single XLU reduce per step
    o_ref[...] = jnp.minimum(o_ref[...], dmin.reshape(1, 1, -1))


def chamfer_min(q_b3p, k_bp3):
    B, _, Pq = q_b3p.shape
    Pk = k_bp3.shape[1]
    TQ = _lane_tile(Pq, 1024)
    TK = _row_tile(Pk, 256)     # small TK: padded (TK, 3->128) VMEM buffer stays small
    chunk = 8 if TK % 8 == 0 else TK
    kern = functools.partial(_chamfer_min_kernel, chunk=chunk)
    out = pl.pallas_call(
        kern,
        out_shape=jax.ShapeDtypeStruct((B, 1, Pq), jnp.float32),
        grid=(B, Pq // TQ, Pk // TK),
        in_specs=[
            pl.BlockSpec((1, 3, TQ), lambda b, qi, ki: (b, 0, qi)),
            pl.BlockSpec((1, TK, 3), lambda b, qi, ki: (b, ki, 0)),
        ],
        out_specs=pl.BlockSpec((1, 1, TQ), lambda b, qi, ki: (b, 0, qi)),
        compiler_params=pltpu.CompilerParams(
            dimension_semantics=("parallel", "parallel", "arbitrary")),
    )(q_b3p, k_bp3)
    return out[:, 0, :]


# --------------------------------------------------------------------------------
# Parameter init (deterministic, PyTorch-style uniform bounds).  Encoder channel
# dims are zero-padded to multiples of 128 for lane-dense kernels; MXU weights bf16.
def init_params(key, input_dim, encoder_filters, latent_dim, decoder_filters):
    params = {"encoder": [], "decoder": [], "latent_dim": encoder_filters[-1]}
    dims = [input_dim] + list(encoder_filters)
    pdims = [input_dim] + [_ceil_to(c, 128) for c in encoder_filters]
    for i in range(len(encoder_filters)):
        key, kw, kb = jax.random.split(key, 3)
        bound = float(dims[i]) ** -0.5
        w = jax.random.uniform(kw, (dims[i], dims[i + 1]), jnp.float32, -bound, bound)
        b = jax.random.uniform(kb, (dims[i + 1],), jnp.float32, -bound, bound)
        wp = jnp.zeros((pdims[i], pdims[i + 1]), jnp.float32)
        wp = wp.at[:dims[i], :dims[i + 1]].set(w)
        bp = jnp.zeros((1, pdims[i + 1]), jnp.float32).at[:, :dims[i + 1]].set(b)
        gamma = jnp.zeros((pdims[i + 1],), jnp.float32).at[:dims[i + 1]].set(1.0)
        beta = jnp.zeros((pdims[i + 1],), jnp.float32)
        params["encoder"].append((wp.astype(jnp.bfloat16), bp, gamma, beta))
    ddims = [encoder_filters[-1]] + list(decoder_filters)
    for i in range(len(decoder_filters)):
        key, kw, kb = jax.random.split(key, 3)
        bound = float(ddims[i]) ** -0.5
        w = jax.random.uniform(kw, (ddims[i], ddims[i + 1]), jnp.float32, -bound, bound)
        b = jax.random.uniform(kb, (1, ddims[i + 1]), jnp.float32, -bound, bound)
        params["decoder"].append((w.astype(jnp.bfloat16), b))
    return params


# --------------------------------------------------------------------------------
# Full forward (Autoencoder.forward, inference side).
def autoencoder_forward(x_ncw, params, npoints, loss_type="cd"):
    B, cin, P = x_ncw.shape
    x_ncw = x_ncw.astype(jnp.float32)
    x_bpc = jnp.transpose(x_ncw, (0, 2, 1))          # (B, P, 3) channels-last
    feats = x_bpc.reshape(B * P, cin)                # rows -> sublanes, channels -> lanes
    M = B * P
    n_layers = len(params["encoder"])

    # scale/shift of the *previous* layer's BatchNorm (identity before layer 0)
    scale = jnp.ones((1, cin), jnp.float32)
    shift = jnp.zeros((1, cin), jnp.float32)
    apply_act = False
    latent = None

    for li, (w, b, gamma, beta) in enumerate(params["encoder"]):
        last = (li == n_layers - 1)
        if not last:
            y, s1, s2 = enc_fused(feats, w, b, scale, shift, apply_act=apply_act)
            s1t = jnp.sum(s1, axis=(0, 1))
            s2t = jnp.sum(s2, axis=(0, 1))
            mean = s1t / M
            # NOTE: E[y^2]-E[y]^2 in f32; can cancel for |mean| >> std (trained nets).
            var = jnp.maximum(s2t / M - mean * mean, 0.0)
            inv = jax.lax.rsqrt(var + _BN_EPS)
            scale = (gamma * inv)[None, :]
            shift = (beta - mean * gamma * inv)[None, :]
            feats = y                                 # bf16 pre-BN activations
            apply_act = True
        else:
            cin_l = feats.shape[1] if feats.ndim == 2 else cin
            s1, s2, ymax, ymin = enc_last(feats.reshape(B, P, cin_l), w, b,
                                          scale, shift, apply_act=apply_act)
            s1t = jnp.sum(s1, axis=(0, 1))
            s2t = jnp.sum(s2, axis=(0, 1))
            mean = s1t / M
            var = jnp.maximum(s2t / M - mean * mean, 0.0)
            inv = jax.lax.rsqrt(var + _BN_EPS)
            sc = gamma * inv
            sh = beta - mean * sc
            ysel = jnp.where(sc[None, :] >= 0.0, ymax[:, 0, :], ymin[:, 0, :])  # (B, C)
            latent = jnp.maximum(ysel * sc[None, :] + sh[None, :], 0.0)

    latent = latent[:, :params["latent_dim"]]         # drop channel padding

    h = decoder_fused(latent, params["decoder"])      # (B, 3*npoints)
    gen_3np = h.reshape(B, 3, npoints)                # torch: gen.reshape(-1, 3, npoints)
    gen = jnp.transpose(gen_3np, (0, 2, 1))           # torch: transpose(1, 2) -> (B, npoints, 3)

    # Chamfer: cdl = per-gen-point nearest target, cdr = per-target-point nearest gen.
    cdl = chamfer_min(gen_3np, x_bpc)                 # queries = gen (lane-dense), targets = x
    cdr = chamfer_min(x_ncw, gen)                     # queries = x  (lane-dense), targets = gen
    cd = jnp.mean(cdl) + jnp.mean(cdr)

    # TODO(synk): emd_approx (auction-based approximate EMD CUDA extension) has no
    # clean Pallas equivalent; reporting 0.0 for emd.
    emd = jnp.float32(0.0)
    loss = cd if loss_type == "cd" else emd
    return gen, loss, cd, emd


if __name__ == "__main__":
    B, input_dim, npoints = 2, 3, 64
    encoder_filters = [64, 128]
    latent_dim = 128
    decoder_filters = [256, 3 * npoints]

    key = jax.random.PRNGKey(0)
    kp, kx = jax.random.split(key)
    params = init_params(kp, input_dim, encoder_filters, latent_dim, decoder_filters)
    x = jax.random.normal(kx, (B, input_dim, npoints), jnp.float32)

    gen, loss, cd, emd = autoencoder_forward(x, params, npoints, loss_type="cd")
    jax.block_until_ready((gen, loss, cd, emd))

    assert gen.shape == (B, npoints, 3)
    assert bool(jnp.isfinite(loss)) and bool(jnp.isfinite(cd))
    print("KERNEL_OK")
</pallas_src>

<mosaic_0001>
module attributes {stable_mosaic.version = 11 : i64} {
  func.func @_enc_fused_kernel(%arg0: i32, %arg1: i32, %arg2: memref<128x3xf32, #tpu.memory_space<vmem>>, %arg3: memref<3x128xbf16, #tpu.memory_space<vmem>>, %arg4: memref<1x128xf32, #tpu.memory_space<vmem>>, %arg5: memref<1x3xf32, #tpu.memory_space<vmem>>, %arg6: memref<1x3xf32, #tpu.memory_space<vmem>>, %arg7: memref<128x128xbf16, #tpu.memory_space<vmem>>, %arg8: memref<1x1x128xf32, #tpu.memory_space<vmem>>, %arg9: memref<1x1x128xf32, #tpu.memory_space<vmem>>) attributes {dimension_semantics = [#tpu.dimension_semantics<parallel>, #tpu.dimension_semantics<arbitrary>], iteration_bounds = array<i64: 1, 1>, scalar_prefetch = 0 : i64, scratch_operands = 0 : i64, tpu.core_type = #tpu.core_type<tc>, window_params = [{transform_indices = @transform_0, window_bounds = array<i64: 128, 3>}, {pipeline_mode = #tpu.pipeline_mode<synchronous>, transform_indices = @transform_1, window_bounds = array<i64: 3, 128>}, {pipeline_mode = #tpu.pipeline_mode<synchronous>, transform_indices = @transform_2, window_bounds = array<i64: 1, 128>}, {pipeline_mode = #tpu.pipeline_mode<synchronous>, transform_indices = @transform_3, window_bounds = array<i64: 1, 3>}, {pipeline_mode = #tpu.pipeline_mode<synchronous>, transform_indices = @transform_4, window_bounds = array<i64: 1, 3>}, {transform_indices = @transform_5, window_bounds = array<i64: 128, 128>}, {transform_indices = @transform_6, window_bounds = array<i64: 1, 1, 128>}, {transform_indices = @transform_7, window_bounds = array<i64: 1, 1, 128>}]} {
    %c0_i32 = arith.constant 0 : i32
    %0 = arith.cmpi eq, %arg1, %c0_i32 : i32
    %1 = arith.extui %0 : i1 to i32
    %c0_i32_0 = arith.constant 0 : i32
    %2 = arith.cmpi ne, %1, %c0_i32_0 : i32
    scf.if %2 {
      %cst_21 = arith.constant 0.000000e+00 : f32
      %39 = vector.broadcast %cst_21 : f32 to vector<1x1x128xf32>
      %c0_22 = arith.constant 0 : index
      %c0_23 = arith.constant 0 : index
      %c0_24 = arith.constant 0 : index
      %40 = vector.load %arg8[%c0_22, %c0_23, %c0_24] : memref<1x1x128xf32, #tpu.memory_space<vmem>>, vector<1x1x128xf32>
      tpu.vector_store %arg8[%c0_22, %c0_23, %c0_24], %39 {strides = array<i32>} : memref<1x1x128xf32, #tpu.memory_space<vmem>>, vector<1x1x128xf32>,
      %cst_25 = arith.constant 0.000000e+00 : f32
      %41 = vector.broadcast %cst_25 : f32 to vector<1x1x128xf32>
      %c0_26 = arith.constant 0 : index
      %c0_27 = arith.constant 0 : index
      %c0_28 = arith.constant 0 : index
      %42 = vector.load %arg9[%c0_26, %c0_27, %c0_28] : memref<1x1x128xf32, #tpu.memory_space<vmem>>, vector<1x1x128xf32>
      tpu.vector_store %arg9[%c0_26, %c0_27, %c0_28], %41 {strides = array<i32>} : memref<1x1x128xf32, #tpu.memory_space<vmem>>, vector<1x1x128xf32>,
    } else {
    }
    %c0 = arith.constant 0 : index
    %c0_1 = arith.constant 0 : index
    %3 = vector.load %arg2[%c0, %c0_1] : memref<128x3xf32, #tpu.memory_space<vmem>>, vector<128x3xf32>
    %c0_2 = arith.constant 0 : index
    %c0_3 = arith.constant 0 : index
    %4 = vector.load %arg3[%c0_2, %c0_3] : memref<3x128xbf16, #tpu.memory_space<vmem>>, vector<3x128xbf16>
    %5 = arith.extf %4 : vector<3x128xbf16> to vector<3x128xf32>
    %6 = vector.extract_strided_slice %3 {offsets = [0, 0], sizes = [128, 1], strides = [1, 1]} : vector<128x3xf32> to vector<128x1xf32>
    %7 = vector.extract_strided_slice %5 {offsets = [0, 0], sizes = [1, 128], strides = [1, 1]} : vector<3x128xf32> to vector<1x128xf32>
    %8 = vector.broadcast %6 : vector<128x1xf32> to vector<128x128xf32>
    %9 = vector.broadcast %7 : vector<1x128xf32> to vector<128x128xf32>
    %10 = arith.mulf %8, %9 : vector<128x128xf32>
    %11 = vector.extract_strided_slice %3 {offsets = [0, 1], sizes = [128, 1], strides = [1, 1]} : vector<128x3xf32> to vector<128x1xf32>
    %12 = vector.extract_strided_slice %5 {offsets = [1, 0], sizes = [1, 128], strides = [1, 1]} : vector<3x128xf32> to vector<1x128xf32>
    %13 = vector.broadcast %11 : vector<128x1xf32> to vector<128x128xf32>
    %14 = vector.broadcast %12 : vector<1x128xf32> to vector<128x128xf32>
    %15 = arith.mulf %13, %14 : vector<128x128xf32>
    %16 = arith.addf %10, %15 : vector<128x128xf32>
    %17 = vector.extract_strided_slice %3 {offsets = [0, 2], sizes = [128, 1], strides = [1, 1]} : vector<128x3xf32> to vector<128x1xf32>
    %18 = vector.extract_strided_slice %5 {offsets = [2, 0], sizes = [1, 128], strides = [1, 1]} : vector<3x128xf32> to vector<1x128xf32>
    %19 = vector.broadcast %17 : vector<128x1xf32> to vector<128x128xf32>
    %20 = vector.broadcast %18 : vector<1x128xf32> to vector<128x128xf32>
    %21 = arith.mulf %19, %20 : vector<128x128xf32>
    %22 = arith.addf %16, %21 : vector<128x128xf32>
    %c0_4 = arith.constant 0 : index
    %c0_5 = arith.constant 0 : index
    %23 = vector.load %arg4[%c0_4, %c0_5] : memref<1x128xf32, #tpu.memory_space<vmem>>, vector<1x128xf32>
    %24 = vector.broadcast %23 : vector<1x128xf32> to vector<128x128xf32>
    %25 = arith.addf %22, %24 : vector<128x128xf32>
    %26 = arith.truncf %25 : vector<128x128xf32> to vector<128x128xbf16>
    %c0_6 = arith.constant 0 : index
    %c0_7 = arith.constant 0 : index
    %27 = vector.load %arg7[%c0_6, %c0_7] : memref<128x128xbf16, #tpu.memory_space<vmem>>, vector<128x128xbf16>
    tpu.vector_store %arg7[%c0_6, %c0_7], %26 {strides = array<i32>} : memref<128x128xbf16, #tpu.memory_space<vmem>>, vector<128x128xbf16>,
    %c0_8 = arith.constant 0 : index
    %c0_9 = arith.constant 0 : index
    %c0_10 = arith.constant 0 : index
    %28 = vector.load %arg8[%c0_8, %c0_9, %c0_10] : memref<1x1x128xf32, #tpu.memory_space<vmem>>, vector<1x1x128xf32>
    %cst = arith.constant dense<0.000000e+00> : vector<128xf32>
    %29 = vector.multi_reduction <add>, %25, %cst [0] : vector<128x128xf32> to vector<128xf32>
    %30 = vector.shape_cast %29 : vector<128xf32> to vector<1x1x128xf32>
    %31 = arith.addf %28, %30 : vector<1x1x128xf32>
    %c0_11 = arith.constant 0 : index
    %c0_12 = arith.constant 0 : index
    %c0_13 = arith.constant 0 : index
    %32 = vector.load %arg8[%c0_11, %c0_12, %c0_13] : memref<1x1x128xf32, #tpu.memory_space<vmem>>, vector<1x1x128xf32>
    tpu.vector_store %arg8[%c0_11, %c0_12, %c0_13], %31 {strides = array<i32>} : memref<1x1x128xf32, #tpu.memory_space<vmem>>, vector<1x1x128xf32>,
    %c0_14 = arith.constant 0 : index
    %c0_15 = arith.constant 0 : index
    %c0_16 = arith.constant 0 : index
    %33 = vector.load %arg9[%c0_14, %c0_15, %c0_16] : memref<1x1x128xf32, #tpu.memory_space<vmem>>, vector<1x1x128xf32>
    %34 = arith.mulf %25, %25 : vector<128x128xf32>
    %cst_17 = arith.constant dense<0.000000e+00> : vector<128xf32>
    %35 = vector.multi_reduction <add>, %34, %cst_17 [0] : vector<128x128xf32> to vector<128xf32>
    %36 = vector.shape_cast %35 : vector<128xf32> to vector<1x1x128xf32>
    %37 = arith.addf %33, %36 : vector<1x1x128xf32>
    %c0_18 = arith.constant 0 : index
    %c0_19 = arith.constant 0 : index
    %c0_20 = arith.constant 0 : index
    %38 = vector.load %arg9[%c0_18, %c0_19, %c0_20] : memref<1x1x128xf32, #tpu.memory_space<vmem>>, vector<1x1x128xf32>
    tpu.vector_store %arg9[%c0_18, %c0_19, %c0_20], %37 {strides = array<i32>} : memref<1x1x128xf32, #tpu.memory_space<vmem>>, vector<1x1x128xf32>,
    return
  }
  func.func @transform_0(%arg0: i32, %arg1: i32) -> (i32, i32) {
    %c1_i32 = arith.constant 1 : i32
    %0 = arith.muli %arg0, %c1_i32 : i32
    %1 = arith.addi %0, %arg1 : i32
    %c0_i32 = arith.constant 0 : i32
    %c0_i32_0 = arith.constant 0 : i32
    return %1, %c0_i32 : i32, i32
  }
  func.func @transform_1(%arg0: i32, %arg1: i32) -> (i32, i32) {
    %c0_i32 = arith.constant 0 : i32
    %c0_i32_0 = arith.constant 0 : i32
    %c0_i32_1 = arith.constant 0 : i32
    return %c0_i32, %c0_i32_0 : i32, i32
  }
  func.func @transform_2(%arg0: i32, %arg1: i32) -> (i32, i32) {
    %c0_i32 = arith.constant 0 : i32
    %c0_i32_0 = arith.constant 0 : i32
    %c0_i32_1 = arith.constant 0 : i32
    return %c0_i32, %c0_i32_0 : i32, i32
  }
  func.func @transform_3(%arg0: i32, %arg1: i32) -> (i32, i32) {
    %c0_i32 = arith.constant 0 : i32
    %c0_i32_0 = arith.constant 0 : i32
    %c0_i32_1 = arith.constant 0 : i32
    return %c0_i32, %c0_i32_0 : i32, i32
  }
  func.func @transform_4(%arg0: i32, %arg1: i32) -> (i32, i32) {
    %c0_i32 = arith.constant 0 : i32
    %c0_i32_0 = arith.constant 0 : i32
    %c0_i32_1 = arith.constant 0 : i32
    return %c0_i32, %c0_i32_0 : i32, i32
  }
  func.func @transform_5(%arg0: i32, %arg1: i32) -> (i32, i32) {
    %c1_i32 = arith.constant 1 : i32
    %0 = arith.muli %arg0, %c1_i32 : i32
    %1 = arith.addi %0, %arg1 : i32
    %c0_i32 = arith.constant 0 : i32
    %c0_i32_0 = arith.constant 0 : i32
    return %1, %c0_i32 : i32, i32
  }
  func.func @transform_6(%arg0: i32, %arg1: i32) -> (i32, i32, i32) {
    %c0_i32 = arith.constant 0 : i32
    %c0_i32_0 = arith.constant 0 : i32
    %c0_i32_1 = arith.constant 0 : i32
    return %arg0, %c0_i32, %c0_i32_0 : i32, i32, i32
  }
  func.func @transform_7(%arg0: i32, %arg1: i32) -> (i32, i32, i32) {
    %c0_i32 = arith.constant 0 : i32
    %c0_i32_0 = arith.constant 0 : i32
    %c0_i32_1 = arith.constant 0 : i32
    return %arg0, %c0_i32, %c0_i32_0 : i32, i32, i32
  }
}

</mosaic_0001>

<bundles_post_ra>
// kernel: tpu_custom_call.1
= control target key start
LH: loop header
LB: loop body
LE: loop exit
PB: predicated region body
PF: predicated region fallthrough
CT: control target
= control target key end

     0   :  { %13 = vsyncpa [#allocation3], 0  ;;  %v754_v2 = vmov 0   ;;  %s1013_s0 = inlined_call_operand.vmem [shape: f32[128,3], index: 0, kind: input, shape index: {}]   ;;  %s1014_s1 = inlined_call_operand.vmem [shape: bf16[3,128], index: 1, kind: input, shape index: {}]   ;;  %s1015_s2 = inlined_call_operand.vmem [shape: f32[1,128], index: 2, kind: input, shape index: {}]   ;;  %s1016_s3 = inlined_call_operand.vmem [shape: f32[1,3], index: 3, kind: input, shape index: {}]   ;;  %s1017_s4 = inlined_call_operand.vmem [shape: f32[1,3], index: 4, kind: input, shape index: {}]   ;;  %s1018_s5 = inlined_call_operand.hbm [shape: bf16[128,128], index: 5, kind: output, shape index: {0}]   ;;  %s1019_s6 = inlined_call_operand.hbm [shape: f32[1,1,128], index: 6, kind: output, shape index: {1}]   ;;  %s1020_s7 = inlined_call_operand.hbm [shape: f32[1,1,128], index: 7, kind: output, shape index: {2}]  }
   0x1   :  { %v57_v0 = vld [vmem:[%s1013_s0 + $0x10] sm:$0xff]  ;;  %v55_v1 = vld [vmem:[%s1013_s0] sm:$0xff]  ;;  %683 = vset.pattern.permute.xlu1 %v754_v2  ;;  %682 = vset.pattern.permute.xlu0 %v754_v2  ;;  %v58_v3 = vld [vmem:[%s1013_s0 + $0x18] sm:$0xff] }
   0x2   :  { %85 = vperm.xlu1 %683, %v57_v0   ;;  %75 = vperm.xlu0 %682, %v55_v1   ;;  %v56_v4 = vld [vmem:[%s1013_s0 + $0x8] sm:$0xff] }
   0x3   :  { %14 = vsyncpa [#allocation5], 0  ;;  %v60_v5 = vld [vmem:[%s1013_s0 + $0x28] sm:$0xff]  ;;  %v59_v6 = vld [vmem:[%s1013_s0 + $0x20] sm:$0xff]  ;;  %v755_v17 = vmov 1   ;;  %v756_v18 = vmov 2   ;;  %v153_v32 = vlaneseq }
   0x4   :  { %v62_v7 = vld [vmem:[%s1013_s0 + $0x38] sm:$0xff]  ;;  %v61_v8 = vld [vmem:[%s1013_s0 + $0x30] sm:$0xff]  ;;  %v64_v9 = vld [vmem:[%s1013_s0 + $0x48] sm:$0xff]  ;;  %v757_v19 = vmov 0.0  }
   0x5   :  { %v63_v10 = vld [vmem:[%s1013_s0 + $0x40] sm:$0xff]  ;;  %v66_v11 = vld [vmem:[%s1013_s0 + $0x58] sm:$0xff]  ;;  %v65_v12 = vld [vmem:[%s1013_s0 + $0x50] sm:$0xff]  ;;  %53 = vst [vmem:[#allocation4] sm:$0x1] %v757_v19  ;;  %v154_v35 = vshrl.u32 %v153_v32, 7 }
   0x6   :  { %90 = vperm.xlu1 %683, %v58_v3   ;;  %80 = vperm.xlu0 %682, %v56_v4   ;;  %v68_v13 = vld [vmem:[%s1013_s0 + $0x68] sm:$0xff]  ;;  %v67_v14 = vld [vmem:[%s1013_s0 + $0x60] sm:$0xff]  ;;  %v70_v15 = vld [vmem:[%s1013_s0 + $0x78] sm:$0xff]  ;;  %54 = vst [vmem:[#allocation6] sm:$0x1] %v757_v19 }
   0x7   :  { %v69_v16 = vld [vmem:[%s1013_s0 + $0x70] sm:$0xff]  ;;  %v71_v36 = vld [vmem:[%s1014_s1] sm:$0x3]  ;;  %v239_v39 = vsub.s32 1, %v154_v35  ;;  %v339_v41 = vsub.s32 2, %v154_v35  ;;  %v155_v42 = vsub.s32 0, %v154_v35 }
   0x8   :  { %v72_v40 = vunpack.c.l.bf16 %v71_v36  ;;  %v892_v62 = vld [vmem:[%s1015_s2] ss:$0 sm:$0xff]  ;;  %s758_s2 = smov [#allocation2]  }
   0x9   :  { %s549_s8 = sshll.u32 %s758_s2, 4  ;;  %s550_s8 = int_to_ptr.vmem [resolvable:$true] %s549_s8 }
   0xa   :  { %100 = vperm.xlu1 %683, %v60_v5   ;;  %95 = vperm.xlu0 %682, %v59_v6   ;;  %v876_v43 = vrot.slane %v72_v40, %v239_v39  ;;  %v878_v46 = vrot.slane %v72_v40, %v339_v41  ;;  %v880_v47 = vrot.slane %v72_v40, %v155_v42  ;;  %s690_s9 = scalar_lea.vmem %s550_s8, 1024  ;;  %p695_p1 = scmp.lt.s32.totalorder %s550_s8, %s550_s8 }
   0xb   :  { %p691_p0 = scmp.ne.s32.totalorder %s550_s8, %s690_s9  ;;  %p696_p2 = scmp.lt.s32.totalorder %s690_s9, %s690_s9 }
   0xd   :  { %p697_p3 = por %p696_p2, %p695_p1 }
   0xe   :  { %110 = vperm.xlu1 %683, %v62_v7   ;;  %105 = vperm.xlu0 %682, %v61_v8  }
   0xf   :  { %p698_p4 = pnand %p697_p3, %p691_p0 }
  0x12   :  { %120 = vperm.xlu1 %683, %v64_v9   ;;  %115 = vperm.xlu0 %682, %v63_v10  }
  0x16   :  { %130 = vperm.xlu1 %683, %v66_v11   ;;  %125 = vperm.xlu0 %682, %v65_v12  }
  0x1a   :  { %140 = vperm.xlu1 %683, %v68_v13   ;;  %135 = vperm.xlu0 %682, %v67_v14  }
  0x1e   :  { %150 = vperm.xlu1 %683, %v70_v15   ;;  %145 = vperm.xlu0 %682, %v69_v16  }
  0x22   :  { %685 = vset.pattern.permute.xlu1 %v755_v17  ;;  %684 = vset.pattern.permute.xlu0 %v755_v17 }
  0x23   :  { %178 = vperm.xlu1 %685, %v56_v4   ;;  %174 = vperm.xlu0 %684, %v55_v1  }
  0x27   :  { %182 = vperm.xlu1 %685, %v57_v0   ;;  %686 = vset.pattern.permute.xlu0 %v756_v18 }
  0x28   :  { %274 = vperm.xlu0 %686, %v55_v1  }
  0x2b   :  { %687 = vset.pattern.permute.xlu1 %v756_v18 }
  0x2c   :  { %278 = vperm.xlu1 %687, %v56_v4   ;;  %282 = vperm.xlu0 %686, %v57_v0  }
  0x30   :  { %688 = vset.pattern.permute.xlu1 %v755_v17  ;;  %286 = vperm.xlu0 %686, %v58_v3  }
  0x31   :  { %186 = vperm.xlu1 %688, %v58_v3  }
  0x34   :  { %290 = vperm.xlu0 %686, %v59_v6  }
  0x35   :  { %190 = vperm.xlu1 %688, %v59_v6  }
  0x38   :  { %294 = vperm.xlu0 %686, %v60_v5  }
  0x39   :  { %194 = vperm.xlu1 %688, %v60_v5  }
  0x3c   :  { %298 = vperm.xlu0 %686, %v61_v8  }
  0x3d   :  { %198 = vperm.xlu1 %688, %v61_v8  }
  0x40   :  { %302 = vperm.xlu0 %686, %v62_v7  }
  0x41   :  { %202 = vperm.xlu1 %688, %v62_v7  }
  0x44   :  { %306 = vperm.xlu0 %686, %v63_v10  }
  0x45   :  { %206 = vperm.xlu1 %688, %v63_v10  }
  0x48   :  { %310 = vperm.xlu0 %686, %v64_v9  }
  0x49   :  { %210 = vperm.xlu1 %688, %v64_v9  }
  0x4c   :  { %314 = vperm.xlu0 %686, %v65_v12  }
  0x4d   :  { %214 = vperm.xlu1 %688, %v65_v12  }
  0x50   :  { %318 = vperm.xlu0 %686, %v66_v11  }
  0x51   :  { %218 = vperm.xlu1 %688, %v66_v11  }
  0x54   :  { %322 = vperm.xlu0 %686, %v67_v14  }
  0x55   :  { %222 = vperm.xlu1 %688, %v67_v14  }
  0x58   :  { %326 = vperm.xlu0 %686, %v68_v13  }
  0x59   :  { %226 = vperm.xlu1 %688, %v68_v13  }
  0x5c   :  { %330 = vperm.xlu0 %686, %v69_v16  }
  0x5d   :  { %230 = vperm.xlu1 %688, %v69_v16  }
  0x61   :  { %234 = vperm.xlu1 %688, %v70_v15  }
  0x65   :  { %689 = vset.pattern.permute.xlu1 %v756_v18 }
  0x66   :  { %334 = vperm.xlu1 %689, %v70_v15  }
  0x7d   :  { %v86_v20 = vpop.permute.xlu1 %85  ;;  %v76_v21 = vpop.permute.xlu0 %75 }
  0x7e   :  { %v157_v51 = vmul.f32 %v880_v47, %v76_v21  ;;  %v159_v0 = vmul.f32 %v880_v47, %v86_v20 }
  0x81   :  { %v91_v22 = vpop.permute.xlu1 %90  ;;  %v81_v23 = vpop.permute.xlu0 %80 }
  0x82   :  { %v158_v54 = vmul.f32 %v880_v47, %v81_v23  ;;  %v160_v6 = vmul.f32 %v880_v47, %v91_v22 }
  0x85   :  { %v851_v24 = vpop.permute.xlu1 %100  ;;  %v96_v25 = vpop.permute.xlu0 %95 }
  0x86   :  { %v161_v17 = vmul.f32 %v880_v47, %v96_v25  ;;  %v162_v32 = vmul.f32 %v880_v47, %v851_v24 }
  0x89   :  { %v853_v26 = vpop.permute.xlu1 %110  ;;  %v855_v27 = vpop.permute.xlu0 %105 }
  0x8d   :  { %v857_v28 = vpop.permute.xlu1 %120  ;;  %v859_v29 = vpop.permute.xlu0 %115 }
  0x91   :  { %v861_v30 = vpop.permute.xlu1 %130  ;;  %v863_v31 = vpop.permute.xlu0 %125 }
  0x95   :  { %v865_v33 = vpop.permute.xlu1 %140  ;;  %v867_v34 = vpop.permute.xlu0 %135 }
  0x99   :  { %v872_v37 = vpop.permute.xlu1 %150  ;;  %v874_v38 = vpop.permute.xlu0 %145 }
  0x9e   :  { %v179_v44 = vpop.permute.xlu1 %178  ;;  %v175_v45 = vpop.permute.xlu0 %174 }
  0x9f   :  { %v241_v48 = vmul.f32 %v876_v43, %v175_v45  ;;  %v242_v52 = vmul.f32 %v876_v43, %v179_v44  ;;  %v163_v44 = vmul.f32 %v880_v47, %v855_v27 }
  0xa1   :  { %v257_v55 = vadd.f32 %v241_v48, %v157_v51  ;;  %v258_v58 = vadd.f32 %v242_v52, %v158_v54 }
  0xa2   :  { %v183_v49 = vpop.permute.xlu1 %182 }
  0xa3   :  { %v275_v50 = vpop.permute.xlu0 %274  ;;  %v243_v61 = vmul.f32 %v876_v43, %v183_v49 }
  0xa4   :  { %v341_v53 = vmul.f32 %v878_v46, %v275_v50 }
  0xa5   :  { %v259_v7 = vadd.f32 %v243_v61, %v159_v0 }
  0xa6   :  { %v357_v59 = vadd.f32 %v341_v53, %v257_v55  ;;  %v164_v53 = vmul.f32 %v880_v47, %v853_v26  ;;  %v165_v26 = vmul.f32 %v880_v47, %v859_v29 }
  0xa7   :  { %v279_v56 = vpop.permute.xlu1 %278  ;;  %v283_v57 = vpop.permute.xlu0 %282 }
  0xa8   :  { %v342_v60 = vmul.f32 %v878_v46, %v279_v56  ;;  %v343_v1 = vmul.f32 %v878_v46, %v283_v57  ;;  %v897_v3 = vadd.f32 %v892_v62, %v357_v59 }
  0xaa   :  { %v358_v63 = vadd.f32 %v342_v60, %v258_v58  ;;  %v359_v10 = vadd.f32 %v343_v1, %v259_v7 }
  0xab   :  { %v287_v2 = vpop.permute.xlu0 %286 }
  0xac   :  { %v900_v4 = vadd.f32 %v892_v62, %v358_v63  ;;  %v187_v5 = vpop.permute.xlu1 %186  ;;  %v344_v11 = vmul.f32 %v878_v46, %v287_v2  ;;  %v910_v18 = vadd.f32 %v892_v62, %v359_v10 }
  0xad   :  { %v244_v8 = vmul.f32 %v876_v43, %v187_v5 }
  0xae   :  { %v629_v9 = vpack.c.bf16 %v900_v4, %v897_v3 }
  0xaf   :  { %v260_v12 = vadd.f32 %v244_v8, %v160_v6  ;;  %v291_v13 = vpop.permute.xlu0 %290  ;;  %v166_v8 = vmul.f32 %v880_v47, %v857_v28  ;;  %v167_v28 = vmul.f32 %v880_v47, %v863_v31  ;;  %v168_v31 = vmul.f32 %v880_v47, %v861_v30 }
  0xb0   :  { %630 = vst [vmem:[#allocation2] sm:$0xff] %v629_v9   ;;  %v191_v14 = vpop.permute.xlu1 %190  ;;  %v345_v35 = vmul.f32 %v878_v46, %v291_v13  ;;  %v502_v9 = vmul.f32 %v900_v4, %v900_v4 }
  0xb1   :  { %v360_v15 = vadd.f32 %v344_v11, %v260_v12  ;;  %v245_v16 = vmul.f32 %v876_v43, %v191_v14  ;;  %v501_v12 = vmul.f32 %v897_v3, %v897_v3 }
  0xb3   :  { %v913_v19 = vadd.f32 %v892_v62, %v360_v15  ;;  %v295_v20 = vpop.permute.xlu0 %294  ;;  %v261_v21 = vadd.f32 %v245_v16, %v161_v17 }
  0xb4   :  { %v195_v22 = vpop.permute.xlu1 %194  ;;  %v346_v40 = vmul.f32 %v878_v46, %v295_v20  ;;  %v477_v20 = vadd.f32 %v900_v4, %v897_v3 }
  0xb5   :  { %v634_v23 = vpack.c.bf16 %v913_v19, %v910_v18  ;;  %v246_v36 = vmul.f32 %v876_v43, %v195_v22  ;;  %v361_v39 = vadd.f32 %v345_v35, %v261_v21  ;;  %v517_v21 = vadd.f32 %v502_v9, %v501_v12 }
  0xb6   :  { %v503_v35 = vmul.f32 %v910_v18, %v910_v18 }
  0xb7   :  { %666 = vst [vmem:[#allocation2 + $0x8] sm:$0xff] %v634_v23   ;;  %v299_v25 = vpop.permute.xlu0 %298  ;;  %v262_v41 = vadd.f32 %v246_v36, %v162_v32  ;;  %v926_v24 = vadd.f32 %v892_v62, %v361_v39 }
  0xb8   :  { %v199_v42 = vpop.permute.xlu1 %198  ;;  %v347_v54 = vmul.f32 %v878_v46, %v299_v25 }
  0xb9   :  { %v247_v45 = vmul.f32 %v876_v43, %v199_v42  ;;  %v362_v48 = vadd.f32 %v346_v40, %v262_v41  ;;  %v504_v40 = vmul.f32 %v913_v19, %v913_v19  ;;  %v478_v41 = vadd.f32 %v477_v20, %v910_v18 }
  0xba   :  { %v518_v42 = vadd.f32 %v517_v21, %v503_v35 }
  0xbb   :  { %v263_v49 = vadd.f32 %v247_v45, %v163_v44  ;;  %v303_v50 = vpop.permute.xlu0 %302  ;;  %v929_v51 = vadd.f32 %v892_v62, %v362_v48  ;;  %v505_v45 = vmul.f32 %v926_v24, %v926_v24  ;;  %v479_v30 = vadd.f32 %v478_v41, %v913_v19 }
  0xbc   :  { %v203_v52 = vpop.permute.xlu1 %202  ;;  %v348_v57 = vmul.f32 %v878_v46, %v303_v50 }
  0xbd   :  { %v248_v55 = vmul.f32 %v876_v43, %v203_v52  ;;  %v639_v27 = vpack.c.bf16 %v929_v51, %v926_v24  ;;  %v363_v56 = vadd.f32 %v347_v54, %v263_v49  ;;  %v519_v54 = vadd.f32 %v518_v42, %v504_v40 }
  0xbf   :  { %v264_v58 = vadd.f32 %v248_v55, %v164_v53  ;;  %v307_v59 = vpop.permute.xlu0 %306  ;;  %667 = vst [vmem:[#allocation2 + $0x10] sm:$0xff] %v639_v27   ;;  %v386_v0 = vadd.f32 %v892_v62, %v363_v56  ;;  %v506_v55 = vmul.f32 %v929_v51, %v929_v51  ;;  %v169_v56 = vmul.f32 %v880_v47, %v867_v34 }
  0xc0   :  { %v207_v60 = vpop.permute.xlu1 %206  ;;  %v349_v10 = vmul.f32 %v878_v46, %v307_v59  ;;  %v170_v34 = vmul.f32 %v880_v47, %v865_v33 }
  0xc1   :  { %v364_v61 = vadd.f32 %v348_v57, %v264_v58  ;;  %v249_v63 = vmul.f32 %v876_v43, %v207_v60  ;;  %v480_v57 = vadd.f32 %v479_v30, %v926_v24  ;;  %v520_v58 = vadd.f32 %v519_v54, %v505_v45 }
  0xc2   :  { %v507_v59 = vmul.f32 %v386_v0, %v386_v0 }
  0xc3   :  { %v943_v1 = vadd.f32 %v892_v62, %v364_v61  ;;  %v311_v2 = vpop.permute.xlu0 %310  ;;  %v265_v5 = vadd.f32 %v249_v63, %v165_v26  ;;  %v481_v63 = vadd.f32 %v480_v57, %v929_v51 }
  0xc4   :  { %v211_v6 = vpop.permute.xlu1 %210  ;;  %v350_v14 = vmul.f32 %v878_v46, %v311_v2 }
  0xc5   :  { %v644_v7 = vpack.c.bf16 %v943_v1, %v386_v0  ;;  %v250_v29 = vmul.f32 %v876_v43, %v211_v6  ;;  %v365_v13 = vadd.f32 %v349_v10, %v265_v5  ;;  %v521_v5 = vadd.f32 %v520_v58, %v506_v55 }
  0xc6   :  { %v508_v6 = vmul.f32 %v943_v1, %v943_v1  ;;  %v482_v24 = vadd.f32 %v481_v63, %v386_v0 }
  0xc7   :  { %668 = vst [vmem:[#allocation2 + $0x18] sm:$0xff] %v644_v7   ;;  %v315_v11 = vpop.permute.xlu0 %314  ;;  %v266_v15 = vadd.f32 %v250_v29, %v166_v8  ;;  %v388_v36 = vadd.f32 %v892_v62, %v365_v13  ;;  %v522_v10 = vadd.f32 %v521_v5, %v507_v59 }
  0xc8   :  { %v215_v16 = vpop.permute.xlu1 %214  ;;  %v351_v3 = vmul.f32 %v878_v46, %v315_v11  ;;  %v483_v51 = vadd.f32 %v482_v24, %v943_v1 }
  0xc9   :  { %v251_v17 = vmul.f32 %v876_v43, %v215_v16  ;;  %v366_v22 = vadd.f32 %v350_v14, %v266_v15  ;;  %v509_v29 = vmul.f32 %v388_v36, %v388_v36  ;;  %v171_v16 = vmul.f32 %v880_v47, %v874_v38 }
  0xca   :  { %v523_v33 = vadd.f32 %v522_v10, %v508_v6 }
  0xcb   :  { %v267_v23 = vadd.f32 %v251_v17, %v167_v28  ;;  %v319_v32 = vpop.permute.xlu0 %318  ;;  %v389_v25 = vadd.f32 %v892_v62, %v366_v22  ;;  %v484_v17 = vadd.f32 %v483_v51, %v388_v36 }
  0xcc   :  { %v219_v39 = vpop.permute.xlu1 %218  ;;  %v352_v49 = vmul.f32 %v878_v46, %v319_v32  ;;  %v524_v21 = vadd.f32 %v523_v33, %v509_v29 }
  0xcd   :  { %v252_v4 = vmul.f32 %v876_v43, %v219_v39  ;;  %v649_v44 = vpack.c.bf16 %v389_v25, %v388_v36  ;;  %v367_v48 = vadd.f32 %v351_v3, %v267_v23  ;;  %v510_v0 = vmul.f32 %v389_v25, %v389_v25 }
  0xce   :  { %v485_v32 = vadd.f32 %v484_v17, %v389_v25 }
  0xcf   :  { %v268_v50 = vadd.f32 %v252_v4, %v168_v31  ;;  %v323_v52 = vpop.permute.xlu0 %322  ;;  %669 = vst [vmem:[#allocation2 + $0x20] sm:$0xff] %v649_v44   ;;  %v390_v60 = vadd.f32 %v892_v62, %v367_v48  ;;  %v525_v40 = vadd.f32 %v524_v21, %v510_v0  ;;  %v172_v44 = vmul.f32 %v880_v47, %v872_v37 }
  0xd0   :  { %v223_v53 = vpop.permute.xlu1 %222  ;;  %v353_v8 = vmul.f32 %v878_v46, %v323_v52 }
  0xd1   :  { %v368_v27 = vadd.f32 %v352_v49, %v268_v50  ;;  %v253_v18 = vmul.f32 %v876_v43, %v223_v53  ;;  %v511_v22 = vmul.f32 %v390_v60, %v390_v60  ;;  %v486_v4 = vadd.f32 %v485_v32, %v390_v60 }
  0xd3   :  { %v391_v19 = vadd.f32 %v892_v62, %v368_v27  ;;  %v327_v61 = vpop.permute.xlu0 %326  ;;  %v269_v26 = vadd.f32 %v253_v18, %v169_v56  ;;  %v526_v36 = vadd.f32 %v525_v40, %v511_v22 }
  0xd4   :  { %v227_v2 = vpop.permute.xlu1 %226  ;;  %v354_v12 = vmul.f32 %v878_v46, %v327_v61 }
  0xd5   :  { %v654_v7 = vpack.c.bf16 %v391_v19, %v390_v60  ;;  %v254_v9 = vmul.f32 %v876_v43, %v227_v2  ;;  %v369_v11 = vadd.f32 %v353_v8, %v269_v26  ;;  %v512_v3 = vmul.f32 %v391_v19, %v391_v19 }
  0xd6   :  { %v487_v45 = vadd.f32 %v486_v4, %v391_v19 }
  0xd7   :  { %670 = vst [vmem:[#allocation2 + $0x28] sm:$0xff] %v654_v7   ;;  %v270_v13 = vadd.f32 %v254_v9, %v170_v34  ;;  %v331_v14 = vpop.permute.xlu0 %330  ;;  %v392_v35 = vadd.f32 %v892_v62, %v369_v11  ;;  %v527_v49 = vadd.f32 %v526_v36, %v512_v3 }
  0xd8   :  { %v231_v15 = vpop.permute.xlu1 %230  ;;  %v355_v23 = vmul.f32 %v878_v46, %v331_v14 }
  0xd9   :  { %v255_v28 = vmul.f32 %v876_v43, %v231_v15  ;;  %v370_v20 = vadd.f32 %v354_v12, %v270_v13  ;;  %v513_v48 = vmul.f32 %v392_v35, %v392_v35  ;;  %v488_v52 = vadd.f32 %v487_v45, %v392_v35 }
  0xdb   :  { %v271_v1 = vadd.f32 %v255_v28, %v171_v16  ;;  %v393_v39 = vadd.f32 %v892_v62, %v370_v20  ;;  %v528_v55 = vadd.f32 %v527_v49, %v513_v48 }
  0xdc   :  { %v235_v31 = vpop.permute.xlu1 %234 }
  0xdd   :  { %v371_v38 = vadd.f32 %v355_v23, %v271_v1  ;;  %v659_v41 = vpack.c.bf16 %v393_v39, %v392_v35  ;;  %v256_v42 = vmul.f32 %v876_v43, %v235_v31  ;;  %v514_v30 = vmul.f32 %v393_v39, %v393_v39 }
  0xde   :  { %v489_v27 = vadd.f32 %v488_v52, %v393_v39 }
  0xdf   :  { %671 = vst [vmem:[#allocation2 + $0x30] sm:$0xff] %v659_v41   ;;  %v394_v25 = vadd.f32 %v892_v62, %v371_v38  ;;  %v272_v53 = vadd.f32 %v256_v42, %v172_v44  ;;  %v529_v56 = vadd.f32 %v528_v55, %v514_v30 }
  0xe1   :  { %v335_v50 = vpop.permute.xlu1 %334  ;;  %v515_v18 = vmul.f32 %v394_v25, %v394_v25  ;;  %v490_v47 = vadd.f32 %v489_v27, %v394_v25 }
  0xe2   :  { %v356_v54 = vmul.f32 %v878_v46, %v335_v50 }
  0xe3   :  { %v530_v60 = vadd.f32 %v529_v56, %v515_v18 }
  0xe4   :  { %v372_v43 = vadd.f32 %v356_v54, %v272_v53 }
  0xe6   :  { %v395_v37 = vadd.f32 %v892_v62, %v372_v43 }
  0xe8   :  { %v664_v57 = vpack.c.bf16 %v395_v37, %v394_v25  ;;  %v491_v58 = vadd.f32 %v490_v47, %v395_v37  ;;  %v516_v59 = vmul.f32 %v395_v37, %v395_v37 }
  0xea   :  { %672 = vst [vmem:[#allocation2 + $0x38] sm:$0xff] %v664_v57   ;;  %v492_v19 = vrot.slane %v491_v58, 4  ;;  %v531_v61 = vadd.f32 %v530_v60, %v516_v59 }
  0xeb   :  { %701 = shalt.err (!%p698_p4)
}
  0xec   :  { %s759_s10 = smov 64   ;;  %s760_s11 = smov 4   ;;  %v493_v46 = vadd.f32 %v492_v19, %v491_v58  ;;  %v532_v62 = vrot.slane %v531_v61, 4  ;;  %v476_v34 = vld [vmem:[#allocation4] sm:$0x1] }
  0xed   :  { %555 = dma.vmem_to_hbm [thread:$0]  %s550_s8, 1024, %s1018_s5, [#allocation3], %s759_s10, %s759_s10, %s760_s11   ;;  %v500_v9 = vld [vmem:[#allocation6] sm:$0x1] }
  0xee   :  { %v494_v63 = vrot.slane %v493_v46, 2  ;;  %v533_v26 = vadd.f32 %v532_v62, %v531_v61  ;;  %s761_s14 = smov [#allocation4]   ;;  %s762_s16 = smov [#allocation6]  }
  0xef   :  { %s562_s15 = sshll.u32 %s761_s14, 4  ;;  %s572_s17 = sshll.u32 %s762_s16, 4  ;;  %s563_s15 = int_to_ptr.vmem [resolvable:$true] %s562_s15  ;;  %s573_s17 = int_to_ptr.vmem [resolvable:$true] %s572_s17 }
  0xf0   :  { %v495_v2 = vadd.f32 %v494_v63, %v493_v46  ;;  %v534_v5 = vrot.slane %v533_v26, 2  ;;  %s710_s5 = scalar_lea.vmem %s563_s15, 16  ;;  %s714_s18 = scalar_lea.vmem %s563_s15, 32 }
  0xf1   :  { %p711_p5 = scmp.ne.s32.totalorder %s563_s15, %s710_s5  ;;  %p715_p6 = scmp.lt.s32.totalorder %s563_s15, %s563_s15 }
  0xf2   :  { %v496_v6 = vrot.slane %v495_v2, 1  ;;  %v535_v7 = vadd.f32 %v534_v5, %v533_v26  ;;  %p716_p7 = scmp.lt.s32.totalorder %s714_s18, %s710_s5 }
  0xf4   :  { %v497_v24 = vadd.f32 %v496_v6, %v495_v2  ;;  %v536_v8 = vrot.slane %v535_v7, 1  ;;  %p717_p8 = por %p716_p7, %p715_p6 }
  0xf6   :  { %v498_v10 = vadd.f32 %v497_v24, %v476_v34  ;;  %v537_v29 = vadd.f32 %v536_v8, %v535_v7  ;;  %p718_p9 = pnand %p717_p8, %p711_p5 }
  0xf8   :  { %499 = vst [vmem:[#allocation4] sm:$0x1] %v498_v10  ;;  %v538_v51 = vadd.f32 %v537_v29, %v500_v9 }
  0xf9   :  { %721 = shalt.err (!%p718_p9)
}
  0xfa   :  { %565 = dma.vmem_to_hbm [thread:$0]  %s563_s15, 16, %s1019_s6, [#allocation5]   ;;  %539 = vst [vmem:[#allocation6] sm:$0x1] %v538_v51 }
  0xfb   :  { %s730_s21 = scalar_lea.vmem %s573_s17, 16  ;;  %s734_s22 = scalar_lea.vmem %s573_s17, 32 }
  0xfc   :  { %p731_p10 = scmp.ne.s32.totalorder %s573_s17, %s730_s21  ;;  %p735_p11 = scmp.lt.s32.totalorder %s573_s17, %s573_s17 }
  0xfd   :  { %p736_p12 = scmp.lt.s32.totalorder %s734_s22, %s730_s21 }
  0xff   :  { %p737_p13 = por %p736_p12, %p735_p11 }
 0x101   :  { %p738_p0 = pnand %p737_p13, %p731_p10 }
 0x103   :  { %741 = shalt.err (!%p738_p0)
}
 0x104   :  { %575 = dma.vmem_to_hbm [thread:$0]  %s573_s17, 16, %s1020_s7, [#allocation5]  }
 0x105   :  { %750 = dma.done.wait [#allocation3], 1024  }
 0x106   :  { %751 = vsyncadd [#allocation3], 4294966272 }
 0x107   :  { %752 = dma.done.wait [#allocation5], 32  }
 0x108   :  { %753 = vsyncadd [#allocation5], 4294967264 }
 0x109   :  { %585 = vsyncpa [#allocation3], 1 }
 0x10a   :  { %586 = vsyncpa [#allocation5], 1 }

</bundles_post_ra>
